<compile_context>
chip_gen: v7x
topology: tpu7x:2x2x1
jax: 0.10.0
libtpu: 0.0.40
codegen_flags: <defaults>
</compile_context>

<pallas_src>
import jax
import jax.numpy as jnp
from jax.experimental import pallas as pl
from jax.experimental.pallas import tpu as pltpu


def _linear_plus_one_kernel(x_ref, wb_ref, o_ref):
    # x_ref:  (N, F_in)
    # wb_ref: (F_in + 1, F_out) -- rows [0:F_in] = W.T, row [F_in] = b + 1.0
    # o_ref:  (N, F_out)
    f_in = x_ref.shape[1]
    x = x_ref[...].astype(jnp.float32)
    wb = wb_ref[...].astype(jnp.float32)

    acc = jnp.dot(x, wb[:f_in, :], preferred_element_type=jnp.float32)
    acc = acc + wb[f_in:f_in + 1, :]  # broadcast bias row (already includes +1.0)

    o_ref[...] = acc.astype(o_ref.dtype)


def prepare_params(w, b):
    """One-time parameter prep (amortized, not per call).

    w: torch-layout weight (F_out, F_in); b: (F_out,).
    Returns packed (F_in + 1, F_out): W.T stacked on top of (b + 1.0).
    """
    w_t = jnp.asarray(w, jnp.float32).T                      # (F_in, F_out)
    b2 = (jnp.asarray(b, jnp.float32) + 1.0).reshape(1, -1)  # (1, F_out), +1.0 folded
    return jnp.concatenate([w_t, b2], axis=0)                # (F_in + 1, F_out)


def linear_plus_one(x, wb):
    """x: (N, F_in); wb: packed (F_in + 1, F_out) from prepare_params()."""
    N = x.shape[0]
    F_out = wb.shape[1]
    return pl.pallas_call(
        _linear_plus_one_kernel,
        out_shape=jax.ShapeDtypeStruct((N, F_out), x.dtype),
        in_specs=[
            pl.BlockSpec(memory_space=pltpu.MemorySpace.VMEM),
            pl.BlockSpec(memory_space=pltpu.MemorySpace.VMEM),
        ],
        out_specs=pl.BlockSpec(memory_space=pltpu.MemorySpace.VMEM),
    )(x, wb)


if __name__ == "__main__":
    key = jax.random.PRNGKey(0)
    kx, kw, kb = jax.random.split(key, 3)

    N, F_in, F_out = 2, 6, 4

    # Deterministic parameter init (mimics nn.Linear's uniform(-1/sqrt(fan_in), ...)).
    bound = 1.0 / (F_in ** 0.5)
    w = jax.random.uniform(kw, (F_out, F_in), jnp.float32, -bound, bound)  # torch layout (out, in)
    b = jax.random.uniform(kb, (F_out,), jnp.float32, -bound, bound)

    x = jax.random.normal(kx, (N, F_in), jnp.float32)

    wb = prepare_params(w, b)          # one-time host-side fold + transpose + pack
    out = linear_plus_one(x, wb)
    jax.block_until_ready(out)

    # Reference check in plain JAX.
    ref = x @ w.T + b + 1.0
    assert jnp.allclose(out, ref, atol=1e-5, rtol=1e-5), (out, ref)

    print("KERNEL_OK")
</pallas_src>

<mosaic_0001>
module attributes {stable_mosaic.version = 11 : i64} {
  func.func @_linear_plus_one_kernel(%arg0: memref<2x6xf32, #tpu.memory_space<vmem>>, %arg1: memref<7x4xf32, #tpu.memory_space<vmem>>, %arg2: memref<2x4xf32, #tpu.memory_space<vmem>>) attributes {dimension_semantics = [], scalar_prefetch = 0 : i64, scratch_operands = 0 : i64, tpu.core_type = #tpu.core_type<tc>} {
    %c0 = arith.constant 0 : index
    %c0_0 = arith.constant 0 : index
    %0 = vector.load %arg0[%c0, %c0_0] : memref<2x6xf32, #tpu.memory_space<vmem>>, vector<2x6xf32>
    %c0_1 = arith.constant 0 : index
    %c0_2 = arith.constant 0 : index
    %1 = vector.load %arg1[%c0_1, %c0_2] : memref<7x4xf32, #tpu.memory_space<vmem>>, vector<7x4xf32>
    %2 = vector.extract_strided_slice %1 {offsets = [0, 0], sizes = [6, 4], strides = [1, 1]} : vector<7x4xf32> to vector<6x4xf32>
    %cst = arith.constant dense<0.000000e+00> : vector<2x4xf32>
    %3 = tpu.matmul %0, %2, %cst {dimension_numbers = #tpu.dot_dimension_numbers<[1], [0], [0], [1], [0, 0, 1, 1], [], []>} : vector<2x6xf32>, vector<6x4xf32>, vector<2x4xf32> -> vector<2x4xf32>
    %4 = vector.extract_strided_slice %1 {offsets = [6, 0], sizes = [1, 4], strides = [1, 1]} : vector<7x4xf32> to vector<1x4xf32>
    %5 = vector.broadcast %4 : vector<1x4xf32> to vector<2x4xf32>
    %6 = arith.addf %3, %5 : vector<2x4xf32>
    %c0_3 = arith.constant 0 : index
    %c0_4 = arith.constant 0 : index
    %7 = vector.load %arg2[%c0_3, %c0_4] : memref<2x4xf32, #tpu.memory_space<vmem>>, vector<2x4xf32>
    tpu.vector_store %arg2[%c0_3, %c0_4], %6 {strides = array<i32>} : memref<2x4xf32, #tpu.memory_space<vmem>>, vector<2x4xf32>,
    return
  }
}

</mosaic_0001>

<bundles_post_ra>
// kernel: tpu_custom_call.1
= control target key start
LH: loop header
LB: loop body
LE: loop exit
PB: predicated region body
PF: predicated region fallthrough
CT: control target
= control target key end

     0   :  { %vm22_vm0 = vcmask 1045504   ;;  %vm18_vm1 = vcmask 48128   ;;  %v148_v1 = vmov 0.0   ;;  %vm149_vm2 = vmmov 0   ;;  %s184_s0 = inlined_call_operand.vmem [shape: f32[2,6], index: 0, kind: input, shape index: {}]   ;;  %s185_s1 = inlined_call_operand.vmem [shape: f32[7,4], index: 1, kind: input, shape index: {}]   ;;  %s186_s2 = inlined_call_operand.hbm [shape: f32[2,4], index: 2, kind: output, shape index: {}]  }
   0x1   :  { %v13_v0 = vld [vmem:[%s185_s1] sm:$0x7f]  ;;  %116 = vmatprep.subr.mxu0 %v148_v1  ;;  %118 = vmatprep.mubr.msk.f32.mxu0 %vm149_vm2, %v148_v1 }
   0x2   :  { %v12_v2 = vld [vmem:[%s184_s0] sm:$0x3] }
   0x3   :  { %7 = vsyncpa [#allocation3], 0  ;;  %117 = vmatpush3.msk.msra.mxu0 %vm22_vm0, %v13_v0  ;;  %v14_v3 = vlaneseq  ;;  %s150_s13 = smov [#allocation2]   ;;  %vm96_vm3 = vcmask 25600  }
   0x4   :  { %119 = vmatmul.mubr.msk.f32.vlgmr.msra.gmra.mrb[0].mxu0 %vm18_vm1, %v12_v2  ;;  %s104_s14 = sshll.u32 %s150_s13, 4  ;;  %s105_s14 = int_to_ptr.vmem [resolvable:$true] %s104_s14 }
   0x5   :  { %v15_v4 = vshrl.u32 %v14_v3, 7  ;;  %s124_s1 = scalar_lea.vmem %s105_s14, 32  ;;  %p129_p1 = scmp.lt.s32.totalorder %s105_s14, %s105_s14 }
   0x6   :  { %p125_p0 = scmp.ne.s32.totalorder %s105_s14, %s124_s1  ;;  %p130_p2 = scmp.lt.s32.totalorder %s124_s1, %s124_s1 }
   0x7   :  { %v16_v5 = vsub.s32 6, %v15_v4 }
   0x8   :  { %p131_p3 = por %p130_p2, %p129_p1 }
   0x9   :  { %v17_v6 = vrot.slane %v13_v0, %v16_v5 }
   0xa   :  { %p132_p4 = pnand %p131_p3, %p125_p0 }
  0xd7   :  { %v92_v7 = vpop.f32.mrb[0].mxu0 }
  0xd8   :  { %v93_v8 = vadd.f32 %v92_v7, %v17_v6  ;;  %v120_v9 = vpop.f32.mrb[1].mxu0 }
  0xda   :  { %97 = vst.msk [vmem:[#allocation2] sm:$0x3] %vm96_vm3, %v93_v8 }
  0xdb   :  { %135 = shalt.err (!%p132_p4)
}
  0xdc   :  { %s136_s16 = scalar_lea.hbm %s186_s2, 32 }
  0xdd   :  { %p137_p5 = scmp.ne.s32.totalorder %s186_s2, %s136_s16  ;;  %p140_p6 = scmp.lt.u32.totalorder %s136_s16, %s186_s2 }
  0xdf   :  { %p142_p7 = pnand %p140_p6, %p137_p5 }
  0xe1   :  { %145 = shalt.err (!%p142_p7)
}
  0xe2   :  { %107 = dma.vmem_to_hbm [thread:$0]  %s105_s14, 32, %s186_s2, [#allocation3]  }
  0xe3   :  { %146 = dma.done.wait [#allocation3], 32  }
  0xe4   :  { %147 = vsyncadd [#allocation3], 4294967264 }
  0xe5   :  { %111 = vsyncpa [#allocation3], 1 }

</bundles_post_ra>
